<compile_context>
chip_gen: v7x
topology: tpu7x:2x2x1
jax: 0.10.0
libtpu: 0.0.40
codegen_flags: <defaults>
</compile_context>

<pallas_src>
import functools

import jax
import jax.numpy as jnp
from jax import lax
from jax.experimental import pallas as pl
from jax.experimental.pallas import tpu as pltpu

LANES = 128
MAX_TILE_ROWS = 8192       # 8192*128*4 B = 4 MiB (f32) / 2 MiB (bf16) per tile
PAD_LOGIT = -1e4           # with target 0: bce==0 and exp(-gamma*u)==0 -> loss == 0 (f32 math)


def _cdiv(a, b):
    return (a + b - 1) // b


def _is_multi_tensorcore():
    # Only chips where a 'parallel' grid axis actually buys a second TensorCore
    # (v4/v5p megacore, v7x dual-TC). On v5e/v6e a chunk split is pure serial overhead.
    try:
        kind = jax.devices()[0].device_kind.lower()
    except Exception:
        return False
    return any(tag in kind for tag in ("v4", "v5p", "v7", "7x"))


def _focal_loss_kernel(x_ref, t_ref, out_ref, acc_ref, *, gamma,
                       tiles_per_chunk, rows_valid):
    p = pl.program_id(0)
    i = pl.program_id(1)
    tile_rows = x_ref.shape[0]

    @pl.when(i == 0)
    def _():
        acc_ref[...] = jnp.zeros_like(acc_ref)

    x = x_ref[...].astype(jnp.float32)
    t = t_ref[...].astype(jnp.float32)      # bf16 {0,1} -> exact f32

    # Numerically stable BCE-with-logits (matches torch, reduction='none'):
    #   softplus(x) = max(x,0) + log1p(exp(-|x|));  bce = softplus(x) - x*t
    e = jnp.exp(-jnp.abs(x))
    softplus = jnp.maximum(x, 0.0) + jnp.log1p(e)
    xt = x * t
    bce = softplus - xt

    # Hard-label identity:  1 - pt = exp(-(softplus(x) - x*(1-t)))
    #   t==1 -> sigmoid(-x),  t==0 -> sigmoid(x)   (no divide / select / pow)
    u = (softplus - x) + xt
    w = jnp.exp(u * (-gamma))                # (1 - pt) ** gamma
    loss = w * bce                           # alpha applied once in the epilogue (wrapper)

    # Number of in-bounds rows of this tile (rows beyond the 2-D array are OOB garbage
    # from the trailing partial block and must not be accumulated).
    row_start = (p * tiles_per_chunk + i) * tile_rows
    rem = rows_valid - row_start

    def _accum(vals):
        # Lane/sublane-wise accumulation (pure vector adds) into the (8, 128) scratch.
        acc_ref[...] += jnp.sum(vals.reshape(tile_rows // 8, 8, LANES), axis=0)

    @pl.when(rem >= tile_rows)               # common path: no mask ops at all
    def _():
        _accum(loss)

    @pl.when(rem < tile_rows)                # ragged tail tile only
    def _():
        rows = lax.broadcasted_iota(jnp.int32, (tile_rows, LANES), 0)
        _accum(jnp.where(rows < rem, loss, 0.0))

    # Single cross-lane reduce + scalar store, once per chunk.
    @pl.when(i == pl.num_programs(1) - 1)
    def _():
        out_ref[...] = jnp.sum(acc_ref[...]).reshape(1, 1, 1)


def focal_loss(inputs, targets, alpha=1.0, gamma=2.0, reduction="mean"):
    assert inputs.shape == targets.shape
    assert reduction in ("mean", "sum")
    n = inputs.size

    flat_x = inputs.reshape(-1)
    flat_t = targets.reshape(-1)
    # Narrow the targets stream: hard {0,1} labels are exact in bf16 (6 B/elem HBM
    # instead of 8). In a real pipeline the labels should arrive narrow upstream so
    # this cast fuses away; here it is a tiny standalone op.
    if flat_t.dtype.itemsize > 2:
        flat_t = flat_t.astype(jnp.bfloat16)
    row_align = 32 if flat_t.dtype.itemsize == 1 else 16   # int8 / bf16 sublane packing

    rows = _cdiv(n, LANES)
    rows_alloc = rows if rows >= row_align else row_align   # tiny inputs: one aligned tile
    tile_rows = min(MAX_TILE_ROWS, (rows_alloc // row_align) * row_align)
    num_tiles = _cdiv(rows_alloc, tile_rows)

    # Chunk axis only where it buys a second TensorCore, and only if it splits evenly
    # (so no grid step maps to a fully out-of-bounds block).
    chunks = 2 if (_is_multi_tensorcore() and num_tiles >= 2 and num_tiles % 2 == 0) else 1
    tiles_per_chunk = num_tiles // chunks

    total = rows_alloc * LANES
    pad = total - n
    if pad:
        # Only for the <=127-element lane tail (N % 128 != 0) or tiny inputs.
        # Sentinel logits + 0 targets contribute exactly 0 loss (verified in f32).
        # Lane-aligned inputs take the no-copy path above.
        flat_x = jnp.pad(flat_x, (0, pad), constant_values=PAD_LOGIT)
        flat_t = jnp.pad(flat_t, (0, pad))
    x2 = flat_x.reshape(rows_alloc, LANES)
    t2 = flat_t.reshape(rows_alloc, LANES)

    kernel = functools.partial(
        _focal_loss_kernel, gamma=float(gamma),
        tiles_per_chunk=tiles_per_chunk, rows_valid=rows_alloc)

    def tile_map(p, i):
        return (p * tiles_per_chunk + i, 0)

    cost = pl.CostEstimate(
        flops=int(14 * total),
        transcendentals=int(3 * total),
        bytes_accessed=int(x2.size * x2.dtype.itemsize
                           + t2.size * t2.dtype.itemsize + chunks * 4),
    )

    partials = pl.pallas_call(
        kernel,
        out_shape=jax.ShapeDtypeStruct((chunks, 1, 1), jnp.float32),
        grid_spec=pltpu.PrefetchScalarGridSpec(
            num_scalar_prefetch=0,
            grid=(chunks, tiles_per_chunk),
            in_specs=[pl.BlockSpec((tile_rows, LANES), tile_map),
                      pl.BlockSpec((tile_rows, LANES), tile_map)],
            # One (1,1,1) partial-sum block per chunk, resident across the inner
            # (reduction) axis -> accumulator pattern per TensorCore.
            out_specs=pl.BlockSpec((1, 1, 1), lambda p, i: (p, 0, 0)),
            scratch_shapes=[pltpu.VMEM((8, LANES), jnp.float32)],
        ),
        compiler_params=pltpu.CompilerParams(
            dimension_semantics=("parallel", "arbitrary"),
            vmem_limit_bytes=32 * 1024 * 1024,
        ),
        cost_estimate=cost,
    )(x2, t2)

    # alpha folded into the scalar epilogue; mean divides by the ORIGINAL n.
    loss_sum = jnp.sum(partials) * jnp.float32(alpha)
    if reduction == "mean":
        return loss_sum / jnp.float32(n)
    return loss_sum


def _focal_loss_ref(inputs, targets, alpha=1.0, gamma=2.0, reduction="mean"):
    x = inputs.astype(jnp.float32)
    t = targets.astype(jnp.float32)
    bce = jnp.maximum(x, 0.0) - x * t + jnp.log1p(jnp.exp(-jnp.abs(x)))
    probs = jax.nn.sigmoid(x)
    pt = jnp.where(t == 1.0, probs, 1.0 - probs)
    loss = alpha * (1.0 - pt) ** gamma * bce
    return jnp.mean(loss) if reduction == "mean" else jnp.sum(loss)


if __name__ == "__main__":
    key = jax.random.PRNGKey(0)
    kx, kt = jax.random.split(key)

    # Per-pixel binary classification head (NCHW), lane-aligned: no pad, no copy.
    shape = (2, 4, 16, 16)
    inputs = jax.random.normal(kx, shape, dtype=jnp.float32)
    targets = jax.random.bernoulli(kt, p=0.5, shape=shape).astype(jnp.float32)

    out = jax.block_until_ready(
        focal_loss(inputs, targets, alpha=1.0, gamma=2.0, reduction="mean"))
    ref = _focal_loss_ref(inputs, targets, alpha=1.0, gamma=2.0, reduction="mean")
    assert jnp.allclose(out, ref, rtol=1e-5, atol=1e-6), (out, ref)

    # Ragged row count (rows not a multiple of the tile): exercises the in-kernel
    # tail mask instead of a wrapper-side pad copy; also exercises sum + alpha != 1.
    kx2, kt2 = jax.random.split(kt)
    shape2 = (2, 4, 16, 20)
    inputs2 = jax.random.normal(kx2, shape2, dtype=jnp.float32)
    targets2 = jax.random.bernoulli(kt2, p=0.5, shape=shape2).astype(jnp.float32)
    out2 = jax.block_until_ready(
        focal_loss(inputs2, targets2, alpha=0.25, gamma=2.0, reduction="sum"))
    ref2 = _focal_loss_ref(inputs2, targets2, alpha=0.25, gamma=2.0, reduction="sum")
    assert jnp.allclose(out2, ref2, rtol=1e-5, atol=1e-4), (out2, ref2)

    print("KERNEL_OK")
</pallas_src>

<mosaic_0001>
module attributes {stable_mosaic.version = 11 : i64} {
  func.func @_focal_loss_kernel(%arg0: i32, %arg1: i32, %arg2: memref<16x128xf32, #tpu.memory_space<vmem>>, %arg3: memref<16x128xbf16, #tpu.memory_space<vmem>>, %arg4: memref<1x1x1xf32, #tpu.memory_space<vmem>>, %arg5: memref<8x128xf32, #tpu.memory_space<vmem>>) attributes {dimension_semantics = [#tpu.dimension_semantics<parallel>, #tpu.dimension_semantics<arbitrary>], iteration_bounds = array<i64: 1, 1>, scalar_prefetch = 0 : i64, scratch_operands = 1 : i64, tpu.core_type = #tpu.core_type<tc>, window_params = [{transform_indices = @transform_0, window_bounds = array<i64: 16, 128>}, {transform_indices = @transform_1, window_bounds = array<i64: 16, 128>}, {transform_indices = @transform_2, window_bounds = array<i64: 1, 1, 1>}]} {
    %c0_i32 = arith.constant 0 : i32
    %0 = arith.cmpi eq, %arg1, %c0_i32 : i32
    %1 = arith.extui %0 : i1 to i32
    %c0_i32_0 = arith.constant 0 : i32
    %2 = arith.cmpi ne, %1, %c0_i32_0 : i32
    scf.if %2 {
      %cst_13 = arith.constant 0.000000e+00 : f32
      %35 = vector.broadcast %cst_13 : f32 to vector<8x128xf32>
      %c0_14 = arith.constant 0 : index
      %c0_15 = arith.constant 0 : index
      %36 = vector.load %arg5[%c0_14, %c0_15] : memref<8x128xf32, #tpu.memory_space<vmem>>, vector<8x128xf32>
      tpu.vector_store %arg5[%c0_14, %c0_15], %35 {strides = array<i32>} : memref<8x128xf32, #tpu.memory_space<vmem>>, vector<8x128xf32>,
    } else {
    }
    %c0 = arith.constant 0 : index
    %c0_1 = arith.constant 0 : index
    %3 = vector.load %arg2[%c0, %c0_1] : memref<16x128xf32, #tpu.memory_space<vmem>>, vector<16x128xf32>
    %c0_2 = arith.constant 0 : index
    %c0_3 = arith.constant 0 : index
    %4 = vector.load %arg3[%c0_2, %c0_3] : memref<16x128xbf16, #tpu.memory_space<vmem>>, vector<16x128xbf16>
    %5 = arith.extf %4 : vector<16x128xbf16> to vector<16x128xf32>
    %6 = math.absf %3 : vector<16x128xf32>
    %cst = arith.constant 0.000000e+00 : f32
    %7 = vector.broadcast %cst : f32 to vector<16x128xf32>
    %8 = arith.subf %7, %6 : vector<16x128xf32>
    %9 = math.exp %8 : vector<16x128xf32>
    %cst_4 = arith.constant 0.000000e+00 : f32
    %10 = vector.broadcast %cst_4 : f32 to vector<16x128xf32>
    %11 = arith.maximumf %3, %10 : vector<16x128xf32>
    %12 = math.log1p %9 : vector<16x128xf32>
    %13 = arith.addf %11, %12 : vector<16x128xf32>
    %14 = arith.mulf %3, %5 : vector<16x128xf32>
    %15 = arith.subf %13, %14 : vector<16x128xf32>
    %16 = arith.subf %13, %3 : vector<16x128xf32>
    %17 = arith.addf %16, %14 : vector<16x128xf32>
    %cst_5 = arith.constant -2.000000e+00 : f32
    %18 = vector.broadcast %cst_5 : f32 to vector<16x128xf32>
    %19 = arith.mulf %17, %18 : vector<16x128xf32>
    %20 = math.exp %19 : vector<16x128xf32>
    %21 = arith.mulf %20, %15 : vector<16x128xf32>
    %c1_i32 = arith.constant 1 : i32
    %22 = arith.muli %arg0, %c1_i32 : i32
    %23 = arith.addi %22, %arg1 : i32
    %c16_i32 = arith.constant 16 : i32
    %24 = arith.muli %23, %c16_i32 : i32
    %c16_i32_6 = arith.constant 16 : i32
    %25 = arith.subi %c16_i32_6, %24 : i32
    %c16_i32_7 = arith.constant 16 : i32
    %26 = arith.cmpi sge, %25, %c16_i32_7 : i32
    %27 = arith.extui %26 : i1 to i32
    %c0_i32_8 = arith.constant 0 : i32
    %28 = arith.cmpi ne, %27, %c0_i32_8 : i32
    scf.if %28 {
      %c0_13 = arith.constant 0 : index
      %c0_14 = arith.constant 0 : index
      %35 = vector.load %arg5[%c0_13, %c0_14] : memref<8x128xf32, #tpu.memory_space<vmem>>, vector<8x128xf32>
      %36 = vector.shape_cast %21 : vector<16x128xf32> to vector<2x8x128xf32>
      %cst_15 = arith.constant dense<0.000000e+00> : vector<8x128xf32>
      %37 = vector.multi_reduction <add>, %36, %cst_15 [0] : vector<2x8x128xf32> to vector<8x128xf32>
      %38 = arith.addf %35, %37 : vector<8x128xf32>
      %c0_16 = arith.constant 0 : index
      %c0_17 = arith.constant 0 : index
      %39 = vector.load %arg5[%c0_16, %c0_17] : memref<8x128xf32, #tpu.memory_space<vmem>>, vector<8x128xf32>
      tpu.vector_store %arg5[%c0_16, %c0_17], %38 {strides = array<i32>} : memref<8x128xf32, #tpu.memory_space<vmem>>, vector<8x128xf32>,
    } else {
    }
    %c16_i32_9 = arith.constant 16 : i32
    %29 = arith.cmpi slt, %25, %c16_i32_9 : i32
    %30 = arith.extui %29 : i1 to i32
    %c0_i32_10 = arith.constant 0 : i32
    %31 = arith.cmpi ne, %30, %c0_i32_10 : i32
    scf.if %31 {
      %35 = tpu.iota {dimensions = array<i32: 0>} : vector<16x128xi32>
      %36 = vector.broadcast %25 : i32 to vector<16x128xi32>
      %37 = arith.cmpi slt, %35, %36 : vector<16x128xi32>
      %cst_13 = arith.constant 0.000000e+00 : f32
      %38 = vector.broadcast %cst_13 : f32 to vector<16x128xf32>
      %39 = arith.select %37, %21, %38 : vector<16x128xi1>, vector<16x128xf32>
      %c0_14 = arith.constant 0 : index
      %c0_15 = arith.constant 0 : index
      %40 = vector.load %arg5[%c0_14, %c0_15] : memref<8x128xf32, #tpu.memory_space<vmem>>, vector<8x128xf32>
      %41 = vector.shape_cast %39 : vector<16x128xf32> to vector<2x8x128xf32>
      %cst_16 = arith.constant dense<0.000000e+00> : vector<8x128xf32>
      %42 = vector.multi_reduction <add>, %41, %cst_16 [0] : vector<2x8x128xf32> to vector<8x128xf32>
      %43 = arith.addf %40, %42 : vector<8x128xf32>
      %c0_17 = arith.constant 0 : index
      %c0_18 = arith.constant 0 : index
      %44 = vector.load %arg5[%c0_17, %c0_18] : memref<8x128xf32, #tpu.memory_space<vmem>>, vector<8x128xf32>
      tpu.vector_store %arg5[%c0_17, %c0_18], %43 {strides = array<i32>} : memref<8x128xf32, #tpu.memory_space<vmem>>, vector<8x128xf32>,
    } else {
    }
    %c0_i32_11 = arith.constant 0 : i32
    %32 = arith.cmpi eq, %arg1, %c0_i32_11 : i32
    %33 = arith.extui %32 : i1 to i32
    %c0_i32_12 = arith.constant 0 : i32
    %34 = arith.cmpi ne, %33, %c0_i32_12 : i32
    scf.if %34 {
      %c0_13 = arith.constant 0 : index
      %c0_14 = arith.constant 0 : index
      %35 = vector.load %arg5[%c0_13, %c0_14] : memref<8x128xf32, #tpu.memory_space<vmem>>, vector<8x128xf32>
      %36 = vector.shape_cast %35 : vector<8x128xf32> to vector<1x8x128xf32>
      %cst_15 = arith.constant dense<0.000000e+00> : vector<1xf32>
      %37 = vector.multi_reduction <add>, %36, %cst_15 [1, 2] : vector<1x8x128xf32> to vector<1xf32>
      %38 = vector.shape_cast %37 : vector<1xf32> to vector<1x1x1xf32>
      %39 = vector.extract %38[0, 0, 0] : f32 from vector<1x1x1xf32>
      %40 = vector.broadcast %39 : f32 to vector<1x1x1xf32>
      %c0_16 = arith.constant 0 : index
      %c0_17 = arith.constant 0 : index
      %c0_18 = arith.constant 0 : index
      %41 = vector.load %arg4[%c0_16, %c0_17, %c0_18] : memref<1x1x1xf32, #tpu.memory_space<vmem>>, vector<1x1x1xf32>
      tpu.vector_store %arg4[%c0_16, %c0_17, %c0_18], %40 {strides = array<i32>} : memref<1x1x1xf32, #tpu.memory_space<vmem>>, vector<1x1x1xf32>,
    } else {
    }
    return
  }
  func.func @transform_0(%arg0: i32, %arg1: i32) -> (i32, i32) {
    %c1_i32 = arith.constant 1 : i32
    %0 = arith.muli %arg0, %c1_i32 : i32
    %1 = arith.addi %0, %arg1 : i32
    %c0_i32 = arith.constant 0 : i32
    %c0_i32_0 = arith.constant 0 : i32
    return %1, %c0_i32 : i32, i32
  }
  func.func @transform_1(%arg0: i32, %arg1: i32) -> (i32, i32) {
    %c1_i32 = arith.constant 1 : i32
    %0 = arith.muli %arg0, %c1_i32 : i32
    %1 = arith.addi %0, %arg1 : i32
    %c0_i32 = arith.constant 0 : i32
    %c0_i32_0 = arith.constant 0 : i32
    return %1, %c0_i32 : i32, i32
  }
  func.func @transform_2(%arg0: i32, %arg1: i32) -> (i32, i32, i32) {
    %c0_i32 = arith.constant 0 : i32
    %c0_i32_0 = arith.constant 0 : i32
    %c0_i32_1 = arith.constant 0 : i32
    return %arg0, %c0_i32, %c0_i32_0 : i32, i32, i32
  }
}

</mosaic_0001>

<bundles_post_ra>
// kernel: tpu_custom_call.1
= control target key start
LH: loop header
LB: loop body
LE: loop exit
PB: predicated region body
PF: predicated region fallthrough
CT: control target
= control target key end

     0   :  { %7 = vsyncpa [#allocation4], 0  ;;  %s323_s0 = inlined_call_operand.hbm [shape: f32[16,128], index: 0, kind: input, shape index: {}]   ;;  %s324_s1 = inlined_call_operand.hbm [shape: bf16[16,128], index: 1, kind: input, shape index: {}]   ;;  %s325_s2 = inlined_call_operand.hbm [shape: f32[1,1,1], index: 2, kind: output, shape index: {}]  }
   0x1   :  { %8 = vsyncpa [#allocation7], 0 }
   0x2   :  { %9 = vsyncpa [#allocation5], 0  ;;  %s265_s9 = smov [#allocation3]   ;;  %s193_s13 = scalar_lea.hbm %s323_s0, 256 }
   0x3   :  { %s19_s10 = sshll.u32 %s265_s9, 4  ;;  %p194_p0 = scmp.ne.s32.totalorder %s323_s0, %s193_s13  ;;  %s20_s10 = int_to_ptr.vmem [resolvable:$true] %s19_s10 }
   0x4   :  { %p197_p1 = scmp.lt.u32.totalorder %s193_s13, %s323_s0 }
   0x6   :  { %p199_p2 = pnand %p197_p1, %p194_p0 }
   0x8   :  { %202 = shalt.err (!%p199_p2)
}
   0x9   :  { %s203_s18 = scalar_lea.vmem %s20_s10, 256  ;;  %p208_p4 = scmp.lt.s32.totalorder %s20_s10, %s20_s10 }
   0xa   :  { %p204_p3 = scmp.ne.s32.totalorder %s20_s10, %s203_s18  ;;  %p209_p5 = scmp.lt.s32.totalorder %s203_s18, %s203_s18 }
   0xc   :  { %p210_p6 = por %p209_p5, %p208_p4 }
   0xe   :  { %p211_p7 = pnand %p210_p6, %p204_p3 }
  0x10   :  { %214 = shalt.err (!%p211_p7)
}
  0x11   :  { %s266_s19 = smov 128   ;;  %s267_s20 = smov 8  }
  0x12   :  { %25 = dma.hbm_to_vmem [thread:$0]  %s323_s0, 256, %s20_s10, [#allocation4], %s266_s19, %s266_s19, %s267_s20  }
  0x13   :  { %s268_s23 = smov [#allocation6]   ;;  %s215_s27 = scalar_lea.hbm %s324_s1, 128 }
  0x14   :  { %s35_s24 = sshll.u32 %s268_s23, 4  ;;  %p216_p8 = scmp.ne.s32.totalorder %s324_s1, %s215_s27  ;;  %s36_s24 = int_to_ptr.vmem [resolvable:$true] %s35_s24 }
  0x15   :  { %p219_p9 = scmp.lt.u32.totalorder %s215_s27, %s324_s1 }
  0x17   :  { %p221_p10 = pnand %p219_p9, %p216_p8 }
  0x19   :  { %224 = shalt.err (!%p221_p10)
}
  0x1a   :  { %s225_s4 = scalar_lea.vmem %s36_s24, 128  ;;  %p230_p12 = scmp.lt.s32.totalorder %s36_s24, %s36_s24 }
  0x1b   :  { %p226_p11 = scmp.ne.s32.totalorder %s36_s24, %s225_s4  ;;  %p231_p13 = scmp.lt.s32.totalorder %s225_s4, %s225_s4 }
  0x1d   :  { %p232_p0 = por %p231_p13, %p230_p12 }
  0x1f   :  { %p233_p1 = pnand %p232_p0, %p226_p11 }
  0x21   :  { %236 = shalt.err (!%p233_p1)
}
  0x22   :  { %s269_s0 = smov 64   ;;  %s270_s5 = smov 4  }
  0x23   :  { %41 = dma.hbm_to_vmem [thread:$0]  %s324_s1, 128, %s36_s24, [#allocation7], %s269_s0, %s269_s0, %s270_s5  }
  0x24   :  { %259 = dma.done.wait [#allocation4], 256  }
  0x25   :  { %260 = vsyncadd [#allocation4], 4294967040 }
  0x26   :  { %261 = dma.done.wait [#allocation7], 128  }
  0x27   :  { %262 = vsyncadd [#allocation7], 4294967168  ;;  %v57_v0 = vld [vmem:[#allocation3] sm:$0xff]  ;;  %v58_v1 = vld [vmem:[#allocation3 + $0x8] sm:$0xff]  ;;  %s271_s1 = smov [#allocation8]   ;;  %vm150_vm2 = vcmask 0  }
  0x28   :  { %v63_v2 = vand.u32 2147483647, %v57_v0  ;;  %v64_v3 = vand.u32 2147483647, %v58_v1  ;;  %v169_v17 = vld [vmem:[#allocation6] sm:$0xff]   ;;  %v71_v22 = vmax.f32 %v57_v0, 0.0 }
  0x29   :  { %v170_v21 = vunpack.c.l.bf16 %v169_v17  ;;  %v171_v25 = vunpack.c.h.bf16 %v169_v17  ;;  %v72_v26 = vmax.f32 %v58_v1, 0.0  ;;  %s158_s8 = sshll.u32 %s271_s1, 4  ;;  %s159_s8 = int_to_ptr.vmem [resolvable:$true] %s158_s8 }
  0x2a   :  { %v65_v4 = vsub.f32 0.0, %v63_v2  ;;  %v66_v5 = vsub.f32 0.0, %v64_v3  ;;  %s237_s10 = scalar_lea.vmem %s159_s8, 16  ;;  %s241_s11 = scalar_lea.vmem %s159_s8, 32 }
  0x2b   :  { %v93_v32 = vmul.f32 %v170_v21, %v57_v0  ;;  %v94_v34 = vmul.f32 %v171_v25, %v58_v1  ;;  %p238_p2 = scmp.ne.s32.totalorder %s159_s8, %s237_s10  ;;  %p242_p3 = scmp.lt.s32.totalorder %s159_s8, %s159_s8 }
  0x2c   :  { %v67_v6 = vmul.f32 1.442695, %v65_v4  ;;  %v69_v7 = vmul.f32 1.442695, %v66_v5  ;;  %p243_p4 = scmp.lt.s32.totalorder %s241_s11, %s237_s10 }
  0x2e   :  { %181 = vpow2.f32 %v67_v6  ;;  %p244_p5 = por %p243_p4, %p242_p3 }
  0x2f   :  { %183 = vpow2.f32 %v69_v7 }
  0x30   :  { %p245_p6 = pnand %p244_p5, %p238_p2 }
  0x38   :  { %v182_v8 = vpop.eup %181 }
  0x39   :  { %v184_v9 = vpop.eup %183  ;;  %v73_v10 = vadd.f32 1.0, %v182_v8  ;;  %v76_v12 = vmul.f32 -0.5, %v182_v8  ;;  %v79_v15 = vand.u32 2147483647, %v182_v8 }
  0x3a   :  { %v82_v11 = vadd.f32 1.0, %v184_v9  ;;  %v85_v13 = vmul.f32 -0.5, %v184_v9  ;;  %v88_v18 = vand.u32 2147483647, %v184_v9 }
  0x3b   :  { %185 = vlog2.f32 %v73_v10  ;;  %v77_v14 = vadd.f32 1.0, %v76_v12  ;;  %vm80_vm0 = vcmp.lt.f32.partialorder %v79_v15, 0.0004427343 }
  0x3c   :  { %187 = vlog2.f32 %v82_v11  ;;  %v86_v16 = vadd.f32 1.0, %v85_v13  ;;  %vm89_vm1 = vcmp.lt.f32.partialorder %v88_v18, 0.0004427343 }
  0x3d   :  { %v78_v19 = vmul.f32 %v182_v8, %v77_v14 }
  0x3e   :  { %v87_v23 = vmul.f32 %v184_v9, %v86_v16 }
  0x45   :  { %v186_v20 = vpop.eup %185 }
  0x46   :  { %v188_v24 = vpop.eup %187  ;;  %v75_v27 = vmul.f32 0.6931472, %v186_v20 }
  0x47   :  { %v84_v28 = vmul.f32 0.6931472, %v188_v24 }
  0x48   :  { %v81_v29 = vsel %vm80_vm0, %v78_v19, %v75_v27 }
  0x49   :  { %v90_v30 = vsel %vm89_vm1, %v87_v23, %v84_v28  ;;  %v91_v31 = vadd.f32 %v81_v29, %v71_v22 }
  0x4a   :  { %v92_v33 = vadd.f32 %v90_v30, %v72_v26 }
  0x4b   :  { %v97_v35 = vsub.f32 %v91_v31, %v57_v0  ;;  %v95_v43 = vsub.f32 %v91_v31, %v93_v32 }
  0x4c   :  { %v98_v36 = vsub.f32 %v92_v33, %v58_v1  ;;  %v96_v44 = vsub.f32 %v92_v33, %v94_v34 }
  0x4d   :  { %v99_v37 = vadd.f32 %v97_v35, %v93_v32 }
  0x4e   :  { %v100_v38 = vadd.f32 %v98_v36, %v94_v34 }
  0x4f   :  { %v101_v39 = vmul.f32 -2.0, %v99_v37 }
  0x50   :  { %v102_v40 = vmul.f32 -2.0, %v100_v38 }
  0x51   :  { %v103_v41 = vmul.f32 1.442695, %v101_v39 }
  0x52   :  { %v105_v42 = vmul.f32 1.442695, %v102_v40 }
  0x53   :  { %189 = vpow2.f32 %v103_v41 }
  0x54   :  { %191 = vpow2.f32 %v105_v42 }
  0x5d   :  { %v190_v45 = vpop.eup %189 }
  0x5e   :  { %v192_v46 = vpop.eup %191  ;;  %v107_v47 = vmul.f32 %v190_v45, %v95_v43 }
  0x5f   :  { %v108_v48 = vmul.f32 %v192_v46, %v96_v44 }
  0x61   :  { %v117_v49 = vadd.f32 %v108_v48, %v107_v47 }
  0x63   :  { %140 = vadd.xlane.f32.xlu0 %v117_v49 }
  0xf0   :  { %v141_v50 = vpop.xlane.xlu0 %140 }
  0xf1   :  { %v142_v51 = vrot.slane %v141_v50, 4 }
  0xf3   :  { %v143_v52 = vadd.f32 %v142_v51, %v141_v50 }
  0xf5   :  { %v144_v53 = vrot.slane %v143_v52, 2 }
  0xf7   :  { %v145_v54 = vadd.f32 %v144_v53, %v143_v52 }
  0xf9   :  { %v146_v55 = vrot.slane %v145_v54, 1 }
  0xfb   :  { %v147_v56 = vadd.f32 %v146_v55, %v145_v54 }
  0xfd   :  { %172 = vpush %v147_v56 }
 0x12e   :  { %s173_s9 = spop %172 }
 0x12f   :  { %v149_v57 = vstv %s173_s9 }
 0x130   :  { %151 = vst.msk [vmem:[#allocation8] sm:$0x1] %vm150_vm2, %v149_v57 }
 0x131   :  { %248 = shalt.err (!%p245_p6)
}
 0x132   :  { %s249_s14 = scalar_lea.hbm %s325_s2, 16 }
 0x133   :  { %p250_p7 = scmp.ne.s32.totalorder %s325_s2, %s249_s14  ;;  %p253_p8 = scmp.lt.u32.totalorder %s249_s14, %s325_s2 }
 0x135   :  { %p255_p9 = pnand %p253_p8, %p250_p7 }
 0x137   :  { %258 = shalt.err (!%p255_p9)
}
 0x138   :  { %161 = dma.vmem_to_hbm [thread:$0]  %s159_s8, 16, %s325_s2, [#allocation5]  }
 0x139   :  { %263 = dma.done.wait [#allocation5], 16  }
 0x13a   :  { %264 = vsyncadd [#allocation5], 4294967280 }
 0x13b   :  { %165 = vsyncpa [#allocation4], 1 }
 0x13c   :  { %166 = vsyncpa [#allocation7], 1 }
 0x13d   :  { %167 = vsyncpa [#allocation5], 1 }

</bundles_post_ra>
